<compile_context>
chip_gen: v7x
topology: tpu7x:2x2x1
jax: 0.10.0
libtpu: 0.0.40
codegen_flags: <defaults>
</compile_context>

<pallas_src>
import functools

import jax
import jax.numpy as jnp
import numpy as np
from jax.experimental import pallas as pl
from jax.experimental.pallas import tpu as pltpu


def _hm_stats_kernel(x_ref, f_ref, lbl_ref, stats_ref,
                     xn_ref, m_ref, s_ref, pk_ref, ls_ref,
                     *, inv_temp, tile_n, k_tiles):
    """One (p, k) grid step: consume one (tile_n, D) slab of the memory bank."""
    p = pl.program_id(0)          # bank chunk ("parallel" -> one per TensorCore on v7x)
    k = pl.program_id(1)          # tile within the chunk ("arbitrary" reduction axis)

    @pl.when(k == 0)
    def _init():
        # F.normalize(inputs, dim=1): x / max(||x||, 1e-12) == x * rsqrt(max(||x||^2, 1e-24))
        x = x_ref[...].astype(jnp.float32)
        ssq = jnp.sum(x * x, axis=1, keepdims=True)
        xn = x * jax.lax.rsqrt(jnp.maximum(ssq, 1e-24))
        xn_ref[...] = xn.astype(xn_ref.dtype)            # bf16, fed straight to the MXU
        m_ref[...] = jnp.full_like(m_ref, -jnp.inf)
        s_ref[...] = jnp.zeros_like(s_ref)
        pk_ref[...] = jnp.zeros_like(pk_ref)
        ls_ref[...] = jnp.zeros_like(ls_ref)

    # bf16 x bf16 -> f32 MXU matmul, contracting the feature dim of both operands.
    logits = jax.lax.dot_general(
        xn_ref[...], f_ref[...], (((1,), (1,)), ((), ())),
        preferred_element_type=jnp.float32) * inv_temp          # (B, tile_n)

    # Running per-row sum of logits (for the reference's global-mean shift).
    ls_ref[...] += jnp.sum(logits, axis=1, keepdims=True)

    # Online-softmax accumulation over the memory-bank axis.
    m_old = m_ref[...]
    m_new = jnp.maximum(m_old, jnp.max(logits, axis=1, keepdims=True))
    alpha = jnp.exp(m_old - m_new)
    e = jnp.exp(logits - m_new)
    s_ref[...] = alpha * s_ref[...] + jnp.sum(e, axis=1, keepdims=True)

    # Picked (label) column: integer compare + select; no (B, N) log / float one-hot.
    col0 = (p * k_tiles + k) * tile_n
    col = col0 + jax.lax.broadcasted_iota(jnp.int32, logits.shape, 1)
    picked = jnp.sum(jnp.where(col == lbl_ref[...], e, 0.0), axis=1, keepdims=True)
    pk_ref[...] = alpha * pk_ref[...] + picked
    m_ref[...] = m_new

    @pl.when(k == k_tiles - 1)
    def _finalize():
        # Pack the four (B, 1) per-row stats into lanes 0..3 of a lane-dense (B, 128)
        # output slab (single unmasked store; remaining lanes are don't-care zeros).
        lane = jax.lax.broadcasted_iota(jnp.int32, stats_ref.shape[1:], 1)
        packed = jnp.where(lane == 0, m_ref[...],
                 jnp.where(lane == 1, s_ref[...],
                 jnp.where(lane == 2, pk_ref[...],
                 jnp.where(lane == 3, ls_ref[...], 0.0))))
        stats_ref[0] = packed


def _pick_tile_n(chunk, d, dtype_bytes, budget_bytes=8 << 20):
    """Largest multiple-of-128 divisor of `chunk` whose double-buffered tile fits budget."""
    divisors = [t for t in range(128, chunk + 1, 128) if chunk % t == 0]
    if not divisors:
        return chunk
    fitting = [t for t in divisors if 2 * t * d * dtype_bytes <= budget_bytes]
    return fitting[-1] if fitting else divisors[0]


def hybrid_memory_loss(inputs, labels, features, temp=0.05, *,
                       num_parallel=2, tile_n=None):
    B, D = inputs.shape
    N, Df = features.shape
    if Df != D:
        raise ValueError(f"feature dim mismatch: inputs D={D}, features D={Df}")

    feats = features.astype(jnp.bfloat16)        # half-precision bank (torch buffer is fp16)

    num_p = num_parallel if (num_parallel > 0 and N % num_parallel == 0) else 1
    chunk = N // num_p
    if tile_n is None:
        tile_n = _pick_tile_n(chunk, D, feats.dtype.itemsize)
    if chunk % tile_n != 0:
        raise ValueError(f"tile_n={tile_n} must divide N/num_parallel={chunk}")
    k_tiles = chunk // tile_n

    lbl2d = labels.astype(jnp.int32).reshape(B, 1)

    kernel = functools.partial(_hm_stats_kernel, inv_temp=float(1.0 / temp),
                               tile_n=tile_n, k_tiles=k_tiles)

    stats = pl.pallas_call(
        kernel,
        out_shape=jax.ShapeDtypeStruct((num_p, B, 128), jnp.float32),
        grid_spec=pltpu.PrefetchScalarGridSpec(
            num_scalar_prefetch=0,
            grid=(num_p, k_tiles),
            in_specs=[
                pl.BlockSpec((B, D), lambda p, k: (0, 0)),                     # inputs
                pl.BlockSpec((tile_n, D), lambda p, k: (p * k_tiles + k, 0)),  # bank tile
                pl.BlockSpec((B, 1), lambda p, k: (0, 0)),                     # labels
            ],
            out_specs=pl.BlockSpec((1, B, 128), lambda p, k: (p, 0, 0)),
            scratch_shapes=[
                pltpu.VMEM((B, D), jnp.bfloat16),   # normalized inputs (computed once)
                pltpu.VMEM((B, 1), jnp.float32),    # running row max
                pltpu.VMEM((B, 1), jnp.float32),    # running sum exp(logit - max)
                pltpu.VMEM((B, 1), jnp.float32),    # picked exp(logit - max)
                pltpu.VMEM((B, 1), jnp.float32),    # running row sum of logits
            ]),
        compiler_params=pltpu.CompilerParams(
            dimension_semantics=("parallel", "arbitrary"),
            vmem_limit_bytes=32 * 1024 * 1024),
        cost_estimate=pl.CostEstimate(
            flops=2 * B * N * D,
            transcendentals=B * N + 2 * B * num_p * k_tiles,
            bytes_accessed=N * D * feats.dtype.itemsize + B * D * 4 + B * 4
                           + num_p * B * 128 * 4),
    )(inputs.astype(jnp.float32), feats, lbl2d)

    # --- tiny O(B) epilogue: combine per-chunk partials, take the final log / mask ---
    m = stats[:, :, 0]        # (P, B) per-chunk row max of logits
    s = stats[:, :, 1]        # (P, B) per-chunk sum exp(logit - m)
    pk = stats[:, :, 2]       # (P, B) per-chunk picked exp(logit - m)
    ls = stats[:, :, 3]       # (P, B) per-chunk row sum of logits

    m_row = jnp.max(m, axis=0)                    # (B,) global row max
    scale = jnp.exp(m - m_row[None, :])           # (P, B)
    s_row = jnp.sum(s * scale, axis=0)            # (B,) = sum_n exp(logit - m_row)
    pk_row = jnp.sum(pk * scale, axis=0)          # (B,) = exp(logit_picked - m_row)
    gmean = jnp.sum(ls) / (B * N)                 # reference's logits.mean()

    # probs[b, y_b] = exp(l - gmean) / (sum_n exp(l - gmean) + 1e-6)
    #              = pk_row / (s_row + 1e-6 * exp(gmean - m_row))
    denom = s_row + 1e-6 * jnp.exp(gmean - m_row)
    logp = jnp.log(pk_row / denom + 1e-6)         # eps placement matches torch: log(probs + 1e-6)

    # F.nll_loss(..., ignore_index=-1, reduction='mean')  (all-invalid batch -> NaN, as in torch)
    valid = labels != -1
    nvalid = jnp.sum(valid.astype(jnp.float32))
    return -jnp.sum(jnp.where(valid, logp, 0.0)) / nvalid


class HybridMemoryPallas:
    """JAX/Pallas port of HybridMemory (forward only).

    The memory bank is kept in bfloat16 (the torch buffer is half precision); the
    `labels` buffer is arange(num_samples), so the index_add_/nums/mask machinery of
    the torch forward collapses to a masked softmax over inputs @ features.T / temp.
    """

    def __init__(self, num_features, num_samples, temp=0.05, momentum=0.2, key=None):
        self.num_features = num_features
        self.num_samples = num_samples
        self.temp = temp
        self.momentum = momentum
        key = jax.random.PRNGKey(0) if key is None else key
        feats = jax.random.normal(key, (num_samples, num_features), jnp.float32)
        feats = feats / jnp.linalg.norm(feats, axis=1, keepdims=True)
        self.features = feats.astype(jnp.bfloat16)
        self.labels_buf = jnp.arange(num_samples, dtype=jnp.int32)

    def forward(self, inputs, labels, index, average_center, *,
                num_parallel=2, tile_n=None):
        # `index` / `average_center` only drive the in-place momentum update that the
        # torch module performs in HM.backward (an autograd side effect); they do not
        # affect the forward value.
        # TODO(synk): memory-bank momentum update lives in HM.backward, not ported.
        return hybrid_memory_loss(inputs, labels, self.features, self.temp,
                                  num_parallel=num_parallel, tile_n=tile_n)


def _ref_loss(inputs, labels, features_bf16, temp=0.05):
    """Pure-JAX reference mirroring the torch forward math (bf16 bank, f32 compute)."""
    x = inputs.astype(jnp.float32)
    ssq = jnp.sum(x * x, axis=1, keepdims=True)
    xn = x * jax.lax.rsqrt(jnp.maximum(ssq, 1e-24))
    xb = xn.astype(jnp.bfloat16).astype(jnp.float32)
    fb = features_bf16.astype(jnp.float32)
    logits = (xb @ fb.T) / temp
    exps = jnp.exp(logits - logits.mean())
    probs = exps / (exps.sum(axis=1, keepdims=True) + 1e-6)
    logp = jnp.log(probs + 1e-6)
    valid = labels != -1
    idx = jnp.clip(labels, 0, logits.shape[1] - 1)[:, None].astype(jnp.int32)
    picked = jnp.take_along_axis(logp, idx, axis=1)[:, 0]
    return -jnp.sum(jnp.where(valid, picked, 0.0)) / jnp.sum(valid.astype(jnp.float32))


if __name__ == "__main__":
    B, D, N = 8, 128, 1024        # batch, num_features, num_samples (MXU/lane friendly)
    key = jax.random.PRNGKey(0)
    k_feat, k_in, k_lbl, k_avg = jax.random.split(key, 4)

    mem = HybridMemoryPallas(num_features=D, num_samples=N, temp=0.05,
                             momentum=0.2, key=k_feat)

    inputs = jax.random.normal(k_in, (B, D), jnp.float32)
    labels = jax.random.randint(k_lbl, (B,), 0, N, jnp.int32)
    labels = labels.at[0].set(-1)                 # exercise nll_loss ignore_index=-1
    index = jnp.arange(4, dtype=jnp.int32)        # used only by the (unported) backward
    average_center = jax.random.normal(k_avg, (4, D), jnp.float32)

    ref = _ref_loss(inputs, labels, mem.features, mem.temp)

    # Default tiling heuristic (largest bank tile that fits the double-buffer budget).
    loss = jax.block_until_ready(mem.forward(inputs, labels, index, average_center))
    # Tolerance: kernel and reference share the same bf16 bank / bf16 inputs; residual
    # differences are summation-order + a possible 1-ulp rsqrt/bf16 rounding flip (<~1e-4).
    np.testing.assert_allclose(np.asarray(loss), np.asarray(ref), rtol=1e-3, atol=1e-3)

    # Small tiles: exercises the multi-step online-softmax accumulation per chunk
    # (grid = (2 parallel chunks, 4 arbitrary tiles)).
    loss_tiled = jax.block_until_ready(
        hybrid_memory_loss(inputs, labels, mem.features, mem.temp,
                           num_parallel=2, tile_n=128))
    np.testing.assert_allclose(np.asarray(loss_tiled), np.asarray(ref),
                               rtol=1e-3, atol=1e-3)

    print("KERNEL_OK")
</pallas_src>

<mosaic_0001>
module attributes {stable_mosaic.version = 11 : i64} {
  func.func @_hm_stats_kernel(%arg0: i32, %arg1: i32, %arg2: memref<8x128xf32, #tpu.memory_space<vmem>>, %arg3: memref<512x128xbf16, #tpu.memory_space<vmem>>, %arg4: memref<8x1xi32, #tpu.memory_space<vmem>>, %arg5: memref<1x8x128xf32, #tpu.memory_space<vmem>>, %arg6: memref<8x128xbf16, #tpu.memory_space<vmem>>, %arg7: memref<8x1xf32, #tpu.memory_space<vmem>>, %arg8: memref<8x1xf32, #tpu.memory_space<vmem>>, %arg9: memref<8x1xf32, #tpu.memory_space<vmem>>, %arg10: memref<8x1xf32, #tpu.memory_space<vmem>>) attributes {dimension_semantics = [#tpu.dimension_semantics<parallel>, #tpu.dimension_semantics<arbitrary>], iteration_bounds = array<i64: 2, 1>, scalar_prefetch = 0 : i64, scratch_operands = 5 : i64, tpu.core_type = #tpu.core_type<tc>, window_params = [{pipeline_mode = #tpu.pipeline_mode<synchronous>, transform_indices = @transform_0, window_bounds = array<i64: 8, 128>}, {transform_indices = @transform_1, window_bounds = array<i64: 512, 128>}, {pipeline_mode = #tpu.pipeline_mode<synchronous>, transform_indices = @transform_2, window_bounds = array<i64: 8, 1>}, {transform_indices = @transform_3, window_bounds = array<i64: 1, 8, 128>}]} {
    %c0_i32 = arith.constant 0 : i32
    %0 = arith.cmpi eq, %arg1, %c0_i32 : i32
    %1 = arith.extui %0 : i1 to i32
    %c0_i32_0 = arith.constant 0 : i32
    %2 = arith.cmpi ne, %1, %c0_i32_0 : i32
    scf.if %2 {
      %c0_30 = arith.constant 0 : index
      %c0_31 = arith.constant 0 : index
      %49 = vector.load %arg2[%c0_30, %c0_31] : memref<8x128xf32, #tpu.memory_space<vmem>>, vector<8x128xf32>
      %50 = arith.mulf %49, %49 : vector<8x128xf32>
      %cst_32 = arith.constant dense<0.000000e+00> : vector<8xf32>
      %51 = vector.multi_reduction <add>, %50, %cst_32 [1] : vector<8x128xf32> to vector<8xf32>
      %52 = vector.shape_cast %51 : vector<8xf32> to vector<8x1xf32>
      %cst_33 = arith.constant 1.000000e-24 : f32
      %53 = vector.broadcast %cst_33 : f32 to vector<8x1xf32>
      %54 = arith.maximumf %52, %53 : vector<8x1xf32>
      %55 = math.rsqrt %54 : vector<8x1xf32>
      %56 = vector.broadcast %55 : vector<8x1xf32> to vector<8x128xf32>
      %57 = arith.mulf %49, %56 : vector<8x128xf32>
      %58 = arith.truncf %57 : vector<8x128xf32> to vector<8x128xbf16>
      %c0_34 = arith.constant 0 : index
      %c0_35 = arith.constant 0 : index
      %59 = vector.load %arg6[%c0_34, %c0_35] : memref<8x128xbf16, #tpu.memory_space<vmem>>, vector<8x128xbf16>
      tpu.vector_store %arg6[%c0_34, %c0_35], %58 {strides = array<i32>} : memref<8x128xbf16, #tpu.memory_space<vmem>>, vector<8x128xbf16>,
      %cst_36 = arith.constant 0xFF800000 : f32
      %60 = vector.broadcast %cst_36 : f32 to vector<8x1xf32>
      %c0_37 = arith.constant 0 : index
      %c0_38 = arith.constant 0 : index
      %61 = vector.load %arg7[%c0_37, %c0_38] : memref<8x1xf32, #tpu.memory_space<vmem>>, vector<8x1xf32>
      tpu.vector_store %arg7[%c0_37, %c0_38], %60 {strides = array<i32>} : memref<8x1xf32, #tpu.memory_space<vmem>>, vector<8x1xf32>,
      %cst_39 = arith.constant 0.000000e+00 : f32
      %62 = vector.broadcast %cst_39 : f32 to vector<8x1xf32>
      %c0_40 = arith.constant 0 : index
      %c0_41 = arith.constant 0 : index
      %63 = vector.load %arg8[%c0_40, %c0_41] : memref<8x1xf32, #tpu.memory_space<vmem>>, vector<8x1xf32>
      tpu.vector_store %arg8[%c0_40, %c0_41], %62 {strides = array<i32>} : memref<8x1xf32, #tpu.memory_space<vmem>>, vector<8x1xf32>,
      %cst_42 = arith.constant 0.000000e+00 : f32
      %64 = vector.broadcast %cst_42 : f32 to vector<8x1xf32>
      %c0_43 = arith.constant 0 : index
      %c0_44 = arith.constant 0 : index
      %65 = vector.load %arg9[%c0_43, %c0_44] : memref<8x1xf32, #tpu.memory_space<vmem>>, vector<8x1xf32>
      tpu.vector_store %arg9[%c0_43, %c0_44], %64 {strides = array<i32>} : memref<8x1xf32, #tpu.memory_space<vmem>>, vector<8x1xf32>,
      %cst_45 = arith.constant 0.000000e+00 : f32
      %66 = vector.broadcast %cst_45 : f32 to vector<8x1xf32>
      %c0_46 = arith.constant 0 : index
      %c0_47 = arith.constant 0 : index
      %67 = vector.load %arg10[%c0_46, %c0_47] : memref<8x1xf32, #tpu.memory_space<vmem>>, vector<8x1xf32>
      tpu.vector_store %arg10[%c0_46, %c0_47], %66 {strides = array<i32>} : memref<8x1xf32, #tpu.memory_space<vmem>>, vector<8x1xf32>,
    } else {
    }
    %c0 = arith.constant 0 : index
    %c0_1 = arith.constant 0 : index
    %3 = vector.load %arg6[%c0, %c0_1] : memref<8x128xbf16, #tpu.memory_space<vmem>>, vector<8x128xbf16>
    %c0_2 = arith.constant 0 : index
    %c0_3 = arith.constant 0 : index
    %4 = vector.load %arg3[%c0_2, %c0_3] : memref<512x128xbf16, #tpu.memory_space<vmem>>, vector<512x128xbf16>
    %cst = arith.constant dense<0.000000e+00> : vector<8x512xf32>
    %5 = tpu.matmul %3, %4, %cst {dimension_numbers = #tpu.dot_dimension_numbers<[1], [1], [0], [0], [0, 0, 1, 0], [], []>} : vector<8x128xbf16>, vector<512x128xbf16>, vector<8x512xf32> -> vector<8x512xf32>
    %cst_4 = arith.constant 2.000000e+01 : f32
    %6 = vector.broadcast %cst_4 : f32 to vector<8x512xf32>
    %7 = arith.mulf %5, %6 : vector<8x512xf32>
    %c0_5 = arith.constant 0 : index
    %c0_6 = arith.constant 0 : index
    %8 = vector.load %arg10[%c0_5, %c0_6] : memref<8x1xf32, #tpu.memory_space<vmem>>, vector<8x1xf32>
    %cst_7 = arith.constant dense<0.000000e+00> : vector<8xf32>
    %9 = vector.multi_reduction <add>, %7, %cst_7 [1] : vector<8x512xf32> to vector<8xf32>
    %10 = vector.shape_cast %9 : vector<8xf32> to vector<8x1xf32>
    %11 = arith.addf %8, %10 : vector<8x1xf32>
    %c0_8 = arith.constant 0 : index
    %c0_9 = arith.constant 0 : index
    %12 = vector.load %arg10[%c0_8, %c0_9] : memref<8x1xf32, #tpu.memory_space<vmem>>, vector<8x1xf32>
    tpu.vector_store %arg10[%c0_8, %c0_9], %11 {strides = array<i32>} : memref<8x1xf32, #tpu.memory_space<vmem>>, vector<8x1xf32>,
    %c0_10 = arith.constant 0 : index
    %c0_11 = arith.constant 0 : index
    %13 = vector.load %arg7[%c0_10, %c0_11] : memref<8x1xf32, #tpu.memory_space<vmem>>, vector<8x1xf32>
    %cst_12 = arith.constant dense<0xFF800000> : vector<8xf32>
    %14 = vector.multi_reduction <maximumf>, %7, %cst_12 [1] : vector<8x512xf32> to vector<8xf32>
    %15 = vector.shape_cast %14 : vector<8xf32> to vector<8x1xf32>
    %16 = arith.maximumf %13, %15 : vector<8x1xf32>
    %17 = arith.subf %13, %16 : vector<8x1xf32>
    %18 = math.exp %17 : vector<8x1xf32>
    %19 = vector.broadcast %16 : vector<8x1xf32> to vector<8x512xf32>
    %20 = arith.subf %7, %19 : vector<8x512xf32>
    %21 = math.exp %20 : vector<8x512xf32>
    %c0_13 = arith.constant 0 : index
    %c0_14 = arith.constant 0 : index
    %22 = vector.load %arg8[%c0_13, %c0_14] : memref<8x1xf32, #tpu.memory_space<vmem>>, vector<8x1xf32>
    %23 = arith.mulf %18, %22 : vector<8x1xf32>
    %cst_15 = arith.constant dense<0.000000e+00> : vector<8xf32>
    %24 = vector.multi_reduction <add>, %21, %cst_15 [1] : vector<8x512xf32> to vector<8xf32>
    %25 = vector.shape_cast %24 : vector<8xf32> to vector<8x1xf32>
    %26 = arith.addf %23, %25 : vector<8x1xf32>
    %c0_16 = arith.constant 0 : index
    %c0_17 = arith.constant 0 : index
    %27 = vector.load %arg8[%c0_16, %c0_17] : memref<8x1xf32, #tpu.memory_space<vmem>>, vector<8x1xf32>
    tpu.vector_store %arg8[%c0_16, %c0_17], %26 {strides = array<i32>} : memref<8x1xf32, #tpu.memory_space<vmem>>, vector<8x1xf32>,
    %c1_i32 = arith.constant 1 : i32
    %28 = arith.muli %arg0, %c1_i32 : i32
    %29 = arith.addi %28, %arg1 : i32
    %c512_i32 = arith.constant 512 : i32
    %30 = arith.muli %29, %c512_i32 : i32
    %31 = tpu.iota {dimensions = array<i32: 1>} : vector<8x512xi32>
    %32 = vector.broadcast %30 : i32 to vector<8x512xi32>
    %33 = arith.addi %32, %31 : vector<8x512xi32>
    %c0_18 = arith.constant 0 : index
    %c0_19 = arith.constant 0 : index
    %34 = vector.load %arg4[%c0_18, %c0_19] : memref<8x1xi32, #tpu.memory_space<vmem>>, vector<8x1xi32>
    %35 = vector.broadcast %34 : vector<8x1xi32> to vector<8x512xi32>
    %36 = arith.cmpi eq, %33, %35 : vector<8x512xi32>
    %cst_20 = arith.constant 0.000000e+00 : f32
    %37 = vector.broadcast %cst_20 : f32 to vector<8x512xf32>
    %38 = arith.select %36, %21, %37 : vector<8x512xi1>, vector<8x512xf32>
    %cst_21 = arith.constant dense<0.000000e+00> : vector<8xf32>
    %39 = vector.multi_reduction <add>, %38, %cst_21 [1] : vector<8x512xf32> to vector<8xf32>
    %40 = vector.shape_cast %39 : vector<8xf32> to vector<8x1xf32>
    %c0_22 = arith.constant 0 : index
    %c0_23 = arith.constant 0 : index
    %41 = vector.load %arg9[%c0_22, %c0_23] : memref<8x1xf32, #tpu.memory_space<vmem>>, vector<8x1xf32>
    %42 = arith.mulf %18, %41 : vector<8x1xf32>
    %43 = arith.addf %42, %40 : vector<8x1xf32>
    %c0_24 = arith.constant 0 : index
    %c0_25 = arith.constant 0 : index
    %44 = vector.load %arg9[%c0_24, %c0_25] : memref<8x1xf32, #tpu.memory_space<vmem>>, vector<8x1xf32>
    tpu.vector_store %arg9[%c0_24, %c0_25], %43 {strides = array<i32>} : memref<8x1xf32, #tpu.memory_space<vmem>>, vector<8x1xf32>,
    %c0_26 = arith.constant 0 : index
    %c0_27 = arith.constant 0 : index
    %45 = vector.load %arg7[%c0_26, %c0_27] : memref<8x1xf32, #tpu.memory_space<vmem>>, vector<8x1xf32>
    tpu.vector_store %arg7[%c0_26, %c0_27], %16 {strides = array<i32>} : memref<8x1xf32, #tpu.memory_space<vmem>>, vector<8x1xf32>,
    %c0_i32_28 = arith.constant 0 : i32
    %46 = arith.cmpi eq, %arg1, %c0_i32_28 : i32
    %47 = arith.extui %46 : i1 to i32
    %c0_i32_29 = arith.constant 0 : i32
    %48 = arith.cmpi ne, %47, %c0_i32_29 : i32
    scf.if %48 {
      %49 = tpu.iota {dimensions = array<i32: 1>} : vector<8x128xi32>
      %c0_i32_30 = arith.constant 0 : i32
      %50 = vector.broadcast %c0_i32_30 : i32 to vector<8x128xi32>
      %51 = arith.cmpi eq, %49, %50 : vector<8x128xi32>
      %c0_31 = arith.constant 0 : index
      %c0_32 = arith.constant 0 : index
      %52 = vector.load %arg7[%c0_31, %c0_32] : memref<8x1xf32, #tpu.memory_space<vmem>>, vector<8x1xf32>
      %c1_i32_33 = arith.constant 1 : i32
      %53 = vector.broadcast %c1_i32_33 : i32 to vector<8x128xi32>
      %54 = arith.cmpi eq, %49, %53 : vector<8x128xi32>
      %c0_34 = arith.constant 0 : index
      %c0_35 = arith.constant 0 : index
      %55 = vector.load %arg8[%c0_34, %c0_35] : memref<8x1xf32, #tpu.memory_space<vmem>>, vector<8x1xf32>
      %c2_i32 = arith.constant 2 : i32
      %56 = vector.broadcast %c2_i32 : i32 to vector<8x128xi32>
      %57 = arith.cmpi eq, %49, %56 : vector<8x128xi32>
      %c0_36 = arith.constant 0 : index
      %c0_37 = arith.constant 0 : index
      %58 = vector.load %arg9[%c0_36, %c0_37] : memref<8x1xf32, #tpu.memory_space<vmem>>, vector<8x1xf32>
      %c3_i32 = arith.constant 3 : i32
      %59 = vector.broadcast %c3_i32 : i32 to vector<8x128xi32>
      %60 = arith.cmpi eq, %49, %59 : vector<8x128xi32>
      %c0_38 = arith.constant 0 : index
      %c0_39 = arith.constant 0 : index
      %61 = vector.load %arg10[%c0_38, %c0_39] : memref<8x1xf32, #tpu.memory_space<vmem>>, vector<8x1xf32>
      %cst_40 = arith.constant 0.000000e+00 : f32
      %62 = vector.shape_cast %61 : vector<8x1xf32> to vector<8x1xf32>
      %63 = vector.broadcast %62 : vector<8x1xf32> to vector<8x128xf32>
      %64 = vector.broadcast %cst_40 : f32 to vector<8x128xf32>
      %65 = arith.select %60, %63, %64 : vector<8x128xi1>, vector<8x128xf32>
      %66 = vector.shape_cast %58 : vector<8x1xf32> to vector<8x1xf32>
      %67 = vector.broadcast %66 : vector<8x1xf32> to vector<8x128xf32>
      %68 = arith.select %57, %67, %65 : vector<8x128xi1>, vector<8x128xf32>
      %69 = vector.shape_cast %55 : vector<8x1xf32> to vector<8x1xf32>
      %70 = vector.broadcast %69 : vector<8x1xf32> to vector<8x128xf32>
      %71 = arith.select %54, %70, %68 : vector<8x128xi1>, vector<8x128xf32>
      %72 = vector.shape_cast %52 : vector<8x1xf32> to vector<8x1xf32>
      %73 = vector.broadcast %72 : vector<8x1xf32> to vector<8x128xf32>
      %74 = arith.select %51, %73, %71 : vector<8x128xi1>, vector<8x128xf32>
      %c0_41 = arith.constant 0 : index
      %c0_42 = arith.constant 0 : index
      %c0_43 = arith.constant 0 : index
      %75 = vector.load %arg5[%c0_41, %c0_42, %c0_43] : memref<1x8x128xf32, #tpu.memory_space<vmem>>, vector<1x8x128xf32>
      %76 = vector.shape_cast %75 : vector<1x8x128xf32> to vector<8x128xf32>
      %77 = vector.shape_cast %74 : vector<8x128xf32> to vector<1x8x128xf32>
      tpu.vector_store %arg5[%c0_41, %c0_42, %c0_43], %77 {strides = array<i32>} : memref<1x8x128xf32, #tpu.memory_space<vmem>>, vector<1x8x128xf32>,
    } else {
    }
    return
  }
  func.func @transform_0(%arg0: i32, %arg1: i32) -> (i32, i32) {
    %c0_i32 = arith.constant 0 : i32
    %c0_i32_0 = arith.constant 0 : i32
    %c0_i32_1 = arith.constant 0 : i32
    return %c0_i32, %c0_i32_0 : i32, i32
  }
  func.func @transform_1(%arg0: i32, %arg1: i32) -> (i32, i32) {
    %c1_i32 = arith.constant 1 : i32
    %0 = arith.muli %arg0, %c1_i32 : i32
    %1 = arith.addi %0, %arg1 : i32
    %c0_i32 = arith.constant 0 : i32
    %c0_i32_0 = arith.constant 0 : i32
    return %1, %c0_i32 : i32, i32
  }
  func.func @transform_2(%arg0: i32, %arg1: i32) -> (i32, i32) {
    %c0_i32 = arith.constant 0 : i32
    %c0_i32_0 = arith.constant 0 : i32
    %c0_i32_1 = arith.constant 0 : i32
    return %c0_i32, %c0_i32_0 : i32, i32
  }
  func.func @transform_3(%arg0: i32, %arg1: i32) -> (i32, i32, i32) {
    %c0_i32 = arith.constant 0 : i32
    %c0_i32_0 = arith.constant 0 : i32
    %c0_i32_1 = arith.constant 0 : i32
    return %arg0, %c0_i32, %c0_i32_0 : i32, i32, i32
  }
}

</mosaic_0001>

<bundles_post_ra>
// kernel: tpu_custom_call.1
= control target key start
LH: loop header
LB: loop body
LE: loop exit
PB: predicated region body
PF: predicated region fallthrough
CT: control target
= control target key end

     0   :  { %8 = vsyncpa [#allocation8], 0  ;;  %s1352_s0 = inlined_call_operand.vmem [shape: f32[8,128], index: 0, kind: input, shape index: {}]   ;;  %s1353_s1 = inlined_call_operand.hbm [shape: bf16[1024,128], index: 1, kind: input, shape index: {}]   ;;  %s1354_s2 = inlined_call_operand.vmem [shape: s32[8,1], index: 2, kind: input, shape index: {}]   ;;  %s1355_s3 = inlined_call_operand.hbm [shape: f32[2,8,128], index: 3, kind: output, shape index: {}]  }
   0x1   :  { %10 = vsyncpa [#allocation8 + $0x1], 0 }
   0x2   :  { %11 = vsyncpa [#allocation9], 0 }
   0x3   :  { %13 = vsyncpa [#allocation9 + $0x1], 0  ;;  %s1114_s12 = smov 0   ;;  %s1116_s13 = smov 0  }
   0x4   :  { %s1118_s14 = smov 0   ;;  %s1120_s15 = smov 0  }
   0x5   :  { %s1122_s16 = smov 0   ;;  %s1124_s17 = smov 0  }
   0x6 LB: > { %s776_s18 = sadd.s32 4294967295, %s1085_s17   ;;  %s777_s19 = sadd.s32 4294967294, %s1085_s17   ;;  %s1085_s17 = sphi %s1124_s17, %s19_s17   ;;  %s1081_s16 = sphi %s1122_s16, %s1370_s16   ;;  %s1077_s15 = sphi %s1120_s15, %s1369_s15   ;;  %s1073_s14 = sphi %s1118_s14, %s1368_s14   ;;  %s1069_s13 = sphi %s1116_s13, %s1367_s13   ;;  %s1065_s12 = sphi %s1114_s12, %s1366_s12  }
   0x7   : > { %s31_s20 = sadd.s32 1, %s1081_s16  ;;  %s61_s21 = sadd.s32 1, %s1073_s14 }
   0x8   : > { %p33_p0 = scmp.ge.s32.totalorder %s31_s20, 2  ;;  %p68_p1 = scmp.ne.s32.totalorder %s1073_s14, %s1069_s13 }
   0x9   : > { %p69_p2 = scmp.eq.s32.totalorder %s1085_s17, 0  ;;  %p74_p3 = scmp.ne.s32.totalorder %s1069_s13, %s1065_s12 }
   0xa   : > { %s1372_s20 = smov (%p33_p0, %s31_s20), 0  ;;  %p75_p5 = scmp.eq.s32.totalorder %s776_s18, 0 }
   0xb   : > { %p1155_p4 = por %p69_p2, %p68_p1  ;;  %s58_s23 = ssub.s32 %s1081_s16, %s1372_s20 }
   0xc   : > { %p119_p6 = scmp.eq.s32.totalorder %s776_s18, 1  ;;  %p59_p7 = scmp.eq.s32.totalorder %s58_s23, 0 }
   0xd   : > { %p1161_p8 = por %p75_p5, %p74_p3  ;;  %p125_p10 = scmp.eq.s32.totalorder %s777_s19, 1 }
   0xe   : > { %p1165_p9 = por %p119_p6, %p68_p1  ;;  %p872_p13 = scmp.lt.s32.totalorder %s1085_s17, 2 }
   0xf   : > { %s1170_s26 = scalar_select %p59_p7, %s1073_s14, %s61_s21  }
  0x10   : > { %s1359_s25 = scalar_select %p1165_p9, 1, 0 }
  0x11   : > { %p1172_p11 = por %p125_p10, %p74_p3  ;;  %s151_s28 = sand.u32 1, %s1073_s14  }
  0x12   : > { %s780_s29 = sshll.u32 %s151_s28, 8  ;;  %s823_s30 = sshll.u32 %s1081_s16, 12 }
  0x13   : > { %s1360_s27 = scalar_select %p1172_p11, 1, 0 }
  0x14   : > { %s1183_s6 = scalar_lea.hbm %s1353_s1, %s823_s30  ;;  %s155_s7 = scalar_lea.vmem [#allocation7], %s780_s29 }
  0x15   : > { %s163_s8 = sshll.u32 %s155_s7, 4  ;;  %p1189_p0 = pnand %p872_p13, %p1155_p4  ;;  %s1185_s8 = int_to_ptr.vmem [resolvable:$true] %s163_s8 }
  0x16   : > { %s1194_s10 = scalar_lea.sflag [#allocation8], %s151_s28  ;;  %s973_s11 = scalar_lea.hbm %s1183_s6, 4096 }
  0x17   : > { %p974_p2 = scmp.ne.s32.totalorder %s1183_s6, %s973_s11  ;;  %p975_p3 = pneg %p1189_p0 }
  0x18   : > { %s978_s21 = scalar_lea.hbm %s1353_s1, 8192  ;;  %p979_p4 = scmp.lt.u32.totalorder %s1183_s6, %s1353_s1 }
  0x19   : > { %p976_p5 = pnand %p975_p3, %p974_p2  ;;  %p980_p7 = scmp.lt.u32.totalorder %s978_s21, %s973_s11 }
  0x1a   : > { %p982_p13 = scmp.lt.u32.totalorder %s973_s11, %s1183_s6 }
  0x1b   : > { %p977_p6 = pneg %p976_p5  ;;  %p981_p10 = por %p980_p7, %p979_p4 }
  0x1d   : > { %p983_p12 = por %p982_p13, %p981_p10 }
  0x1f   : > { %p984_p1 = pnand %p983_p12, %p977_p6 }
  0x21   : > { %987 = shalt.err (!%p984_p1)
}
  0x22   : > { %s988_s28 = scalar_lea.vmem %s1185_s8, 4096  ;;  %s1087_s29 = smov [#allocation7]  }
  0x23   : > { %p989_p2 = scmp.ne.s32.totalorder %s1185_s8, %s988_s28  ;;  %s993_s30 = sshll.u32 %s1087_s29, 4  ;;  %s994_s30 = int_to_ptr.vmem [resolvable:$false] %s993_s30 }
  0x24   : > { %s995_s4 = scalar_lea.vmem %s994_s30, 8192  ;;  %p996_p9 = scmp.lt.s32.totalorder %s1185_s8, %s994_s30 }
  0x25   : > { %p991_p5 = pnand %p989_p2, %p975_p3  ;;  %p997_p4 = scmp.lt.s32.totalorder %s995_s4, %s988_s28 }
  0x27   : > { %p992_p11 = pneg %p991_p5  ;;  %p998_p7 = por %p997_p4, %p996_p9 }
  0x29   : > { %p999_p10 = pnand %p998_p7, %p992_p11 }
  0x2b   : > { %1002 = shalt.err (!%p999_p10)
}
  0x2c   : > { %s1088_s5 = smov 64   ;;  %s1089_s7 = smov 4  }
  0x2d   : > { %867 = dma.hbm_to_vmem [thread:$0]  (!%p1189_p0), %s1183_s6, 4096, %s1185_s8, %s1194_s10, %s1088_s5, %s1088_s5, %s1089_s7  }
  0x2e   : > { %p171_p12 = scmp.lt.s32.totalorder %s1085_s17, 3  ;;  %p1362_p1 = scmp.ge.s32.totalorder %s1085_s17, 1 }
  0x30   : > { %p172_p3 = pnand %p1362_p1, %p171_p12 }
  0x31   : > { %s1226_s11 = sand.u32 (!%p172_p3), 1, %s1069_s13  }
  0x32   : > { %175 = sbr.rel (%p172_p3) target bundleno = 1042 (0x412), region = 32  ;;  %s784_s18 = sshll.u32 (!%p172_p3), %s1226_s11, 8 }
  0x33   : > { %s178_s19 = scalar_lea.sflag (!%p172_p3), [#allocation8], %s1226_s11  ;;  %s1230_s21 = scalar_lea.vmem (!%p172_p3), [#allocation7], %s784_s18 }
  0x39   : > { %1056 = dma.done.wait (%p1161_p8), %s178_s19, 4096  }
  0x3a   : > { %1058 = vsyncadd (%p1161_p8), %s178_s19, 4294963200  ;;  %v1239_v0 = vld [vmem:[%s1352_s0] sm:$0xff]  ;;  %v933_v6 = vld [vmem:[%s1230_s21 + $0x48] sm:$0xff]   ;;  %vm220_vm0 = vcmask 7168   ;;  %v1090_v40 = vmov -inf   ;;  %v1091_v59 = vmov 0.0  }
  0x3b   : > { %v212_v1 = vmul.f32 %v1239_v0, %v1239_v0  ;;  %v929_v2 = vld [vmem:[%s1230_s21 + $0x40] sm:$0xff]   ;;  %v934_v7 = vld [vmem:[%s1230_s21 + $0xc8] sm:$0xff]   ;;  %v937_v10 = vld [vmem:[%s1230_s21 + $0x50] sm:$0xff]   ;;  %221 = vst.msk [vmem:[#allocation3] sm:$0xff] %vm220_vm0, %v1090_v40  ;;  %v1092_v60 = vmov 0   ;;  %s818_s10 = sshll.u32 %s1077_s15, 9 }
  0x3c   : > { %v930_v3 = vld [vmem:[%s1230_s21 + $0xc0] sm:$0xff]   ;;  %824 = vmatprep.subr.bf16.mxu0 %v929_v2  ;;  %v935_v8 = vld [vmem:[%s1230_s21 + $0x8] sm:$0xff]   ;;  %v938_v11 = vld [vmem:[%s1230_s21 + $0xd0] sm:$0xff]   ;;  %224 = vst.msk [vmem:[#allocation6] sm:$0xff] %vm220_vm0, %v1091_v59  ;;  %927 = vset.pattern.permute.xlu1 %v1092_v60  ;;  %s785_s22 = sshll.u32 %s1226_s11, 3  ;;  %s820_s23 = sshll.u32 %s1077_s15, 7 }
  0x3d   : > { %213 = vadd.xlane.f32.xlu0 %v212_v1  ;;  %v931_v4 = vld [vmem:[%s1230_s21] sm:$0xff]   ;;  %842 = vmatprep.subr.bf16.mxu1 %v930_v3  ;;  %v936_v9 = vld [vmem:[%s1230_s21 + $0x88] sm:$0xff]   ;;  %v939_v12 = vld [vmem:[%s1230_s21 + $0x10] sm:$0xff]   ;;  %222 = vst.msk [vmem:[#allocation4] sm:$0xff] %vm220_vm0, %v1091_v59  ;;  %s203_s28 = scalar_lea.vmem [#allocation10], %s785_s22  ;;  %s1303_s5 = scalar_lea.hbm %s1355_s3, %s820_s23 }
  0x3e   : > { %v932_v5 = vld [vmem:[%s1230_s21 + $0x80] sm:$0xff]   ;;  %825 = vmatpush3.bf16.xpose.msra.mxu0 %v931_v4  ;;  %v940_v13 = vld [vmem:[%s1230_s21 + $0x90] sm:$0xff]   ;;  %v941_v14 = vld [vmem:[%s1230_s21 + $0x58] sm:$0xff]   ;;  %223 = vst.msk [vmem:[#allocation5] sm:$0xff] %vm220_vm0, %v1091_v59  ;;  %928 = vset.pattern.permute.xlu0 %v1092_v60  ;;  %s697_s29 = sshll.u32 %s203_s28, 4  ;;  %s684_s15 = scalar_lea.sflag [#allocation9], %s1226_s11  ;;  %s1305_s29 = int_to_ptr.vmem [resolvable:$true] %s697_s29 }
  0x3f   : > { %843 = vmatpush3.bf16.xpose.msra.mxu1 %v932_v5  ;;  %826 = vmatprep.subr.bf16.mxu0 %v933_v6  ;;  %v942_v15 = vld [vmem:[%s1230_s21 + $0xd8] sm:$0xff]   ;;  %v945_v18 = vld [vmem:[%s1230_s21 + $0x60] sm:$0xff]   ;;  %v949_v22 = vld [vmem:[%s1230_s21 + $0x68] sm:$0xff]   ;;  %v615_v6 = vlaneseq  ;;  %s1003_s7 = scalar_lea.vmem %s1305_s29, 128  ;;  %p1363_p9 = scmp.ne.s32.totalorder %s1359_s25, 0 }
  0x40   : > { %844 = vmatprep.subr.bf16.mxu1 %v934_v7  ;;  %v943_v16 = vld [vmem:[%s1230_s21 + $0x18] sm:$0xff]   ;;  %v946_v19 = vld [vmem:[%s1230_s21 + $0xe0] sm:$0xff]   ;;  %v950_v23 = vld [vmem:[%s1230_s21 + $0xe8] sm:$0xff]   ;;  %p1004_p8 = scmp.ne.s32.totalorder %s1305_s29, %s1003_s7  ;;  %s1093_s18 = smov [#allocation10]  }
  0x41   : > { %v944_v17 = vld [vmem:[%s1230_s21 + $0x98] sm:$0xff]   ;;  %v947_v20 = vld [vmem:[%s1230_s21 + $0x20] sm:$0xff]   ;;  %v951_v24 = vld [vmem:[%s1230_s21 + $0x28] sm:$0xff]   ;;  %s1007_s19 = sshll.u32 %s1093_s18, 4  ;;  %s1008_s19 = int_to_ptr.vmem [resolvable:$false] %s1007_s19 }
  0x42   : > { %v948_v21 = vld [vmem:[%s1230_s21 + $0xa0] sm:$0xff]   ;;  %v952_v25 = vld [vmem:[%s1230_s21 + $0xa8] sm:$0xff]   ;;  %v953_v26 = vld [vmem:[%s1230_s21 + $0x70] sm:$0xff]   ;;  %p1005_p11 = pnand %p1004_p8, %p1363_p9  ;;  %p1010_p6 = scmp.lt.s32.totalorder %s1305_s29, %s1008_s19 }
  0x43   : > { %v954_v27 = vld [vmem:[%s1230_s21 + $0xf0] sm:$0xff]   ;;  %v957_v30 = vld [vmem:[%s1230_s21 + $0x78] sm:$0xff]   ;;  %v577_v61 = vld [vmem:[#allocation3] sm:$0xff] }
  0x44   : > { %v955_v28 = vld [vmem:[%s1230_s21 + $0x30] sm:$0xff]   ;;  %v958_v31 = vld [vmem:[%s1230_s21 + $0xf8] sm:$0xff]   ;;  %p1006_p0 = pneg %p1005_p11 }
  0x45   : > { %v956_v29 = vld [vmem:[%s1230_s21 + $0xb0] sm:$0xff]   ;;  %v959_v32 = vld [vmem:[%s1230_s21 + $0x38] sm:$0xff]  }
  0x46   : > { %827 = vmatpush3.bf16.xpose.msra.mxu0 %v935_v8  ;;  %v960_v33 = vld [vmem:[%s1230_s21 + $0xb8] sm:$0xff]   ;;  %s1009_s21 = scalar_lea.vmem %s1008_s19, 256 }
  0x47   : > { %845 = vmatpush3.bf16.xpose.msra.mxu1 %v936_v9  ;;  %828 = vmatprep.subr.bf16.mxu0 %v937_v10  ;;  %v625_v3 = vld [vmem:[%s1354_s2] sm:$0xff]  ;;  %p1011_p13 = scmp.lt.s32.totalorder %s1009_s21, %s1003_s7 }
  0x48   : > { %846 = vmatprep.subr.bf16.mxu1 %v938_v11 }
  0x49   : > { %p1012_p2 = por %p1011_p13, %p1010_p6 }
  0x4b   : > { %p1013_p5 = pnand %p1012_p2, %p1006_p0 }
  0x4e   : > { %829 = vmatpush3.bf16.xpose.msra.mxu0 %v939_v12 }
  0x4f   : > { %847 = vmatpush3.bf16.xpose.msra.mxu1 %v940_v13  ;;  %830 = vmatprep.subr.bf16.mxu0 %v941_v14 }
  0x50   : > { %848 = vmatprep.subr.bf16.mxu1 %v942_v15  ;;  %v1285_v15 = vand.u32 127, %v615_v6 }
  0x52   : > { %vm656_vm5 = vcmp.eq.s32.totalorder %v1285_v15, 3  ;;  %vm654_vm6 = vcmp.eq.s32.totalorder %v1285_v15, 2  ;;  %vm652_vm7 = vcmp.eq.s32.totalorder %v1285_v15, 1  ;;  %vm650_vm8 = vcmp.eq.s32.totalorder %v1285_v15, 0 }
  0x56   : > { %831 = vmatpush3.bf16.xpose.msra.mxu0 %v943_v16  ;;  %v617_v16 = vadd.s32 128, %v1285_v15 }
  0x57   : > { %849 = vmatpush3.bf16.xpose.msra.mxu1 %v944_v17  ;;  %832 = vmatprep.subr.bf16.mxu0 %v945_v18  ;;  %v620_v17 = vstv %s818_s10  ;;  %v618_v18 = vadd.s32 256, %v1285_v15 }
  0x58   : > { %850 = vmatprep.subr.bf16.mxu1 %v946_v19  ;;  %v621_v19 = vadd.s32 %v620_v17, %v1285_v15 }
  0x5e   : > { %833 = vmatpush3.bf16.xpose.msra.mxu0 %v947_v20  ;;  %v622_v20 = vadd.s32 %v620_v17, %v617_v16 }
  0x5f   : > { %851 = vmatpush3.bf16.xpose.msra.mxu1 %v948_v21  ;;  %834 = vmatprep.subr.bf16.mxu0 %v949_v22  ;;  %v619_v22 = vadd.s32 384, %v1285_v15 }
  0x60   : > { %852 = vmatprep.subr.bf16.mxu1 %v950_v23  ;;  %v623_v23 = vadd.s32 %v620_v17, %v618_v18 }
  0x66   : > { %835 = vmatpush3.bf16.xpose.msra.mxu0 %v951_v24 }
  0x67   : > { %853 = vmatpush3.bf16.xpose.msra.mxu1 %v952_v25  ;;  %836 = vmatprep.subr.bf16.mxu0 %v953_v26  ;;  %v624_v26 = vadd.s32 %v620_v17, %v619_v22 }
  0x68   : > { %854 = vmatprep.subr.bf16.mxu1 %v954_v27 }
  0x6e   : > { %837 = vmatpush3.bf16.xpose.msra.mxu0 %v955_v28 }
  0x6f   : > { %855 = vmatpush3.bf16.xpose.msra.mxu1 %v956_v29  ;;  %838 = vmatprep.subr.bf16.mxu0 %v957_v30 }
  0x70   : > { %856 = vmatprep.subr.bf16.mxu1 %v958_v31 }
  0x76   : > { %839 = vmatpush3.bf16.xpose.msra.mxu0 %v959_v32 }
  0x77   : > { %857 = vmatpush3.bf16.xpose.msra.mxu1 %v960_v33 }
  0xca   : > { %v214_v34 = vpop.xlane.xlu0 %213 }
  0xcb   : > { %v215_v35 = vmax.f32 %v214_v34, 1e-24 }
  0xcd   : > { %961 = vrsqrt.f32 %v215_v35 }
  0xd7   : > { %v962_v36 = vpop.eup %961 }
  0xd8   : > { %v217_v37 = vmul.f32 %v962_v36, %v1239_v0  ;;  %v568_v0 = vld [vmem:[#allocation6] sm:$0xff] }
  0xda   : > { %v218_v38 = vpack.c.bf16 %v217_v37, %v217_v37 }
  0xdc   : > { %219 = vst [vmem:[#allocation2] sm:$0xf] %v218_v38 }
  0xe3   : > { %v225_v39 = vld [vmem:[#allocation2] sm:$0xf] }
  0xe4   : > { %840 = vmatprep.mubr.bf16.mxu0 %v225_v39  ;;  %858 = vmatprep.mubr.bf16.mxu1 %v225_v39 }
  0xe5   : > { %841 = vmatmul.mubr.bf16.vlgmr.msra.gmra.mrb[0].mxu0 %v225_v39  ;;  %859 = vmatmul.mubr.bf16.vlgmr.msra.gmra.mrb[0].mxu1 %v225_v39 }
 0x1b8   : > { %v516_v41 = vpop.f32.mrb[0].mxu0  ;;  %v557_v42 = vpop.f32.mrb[0].mxu1 }
 0x1b9   : > { %v564_v43 = vmul.f32 20.0, %v516_v41  ;;  %v566_v44 = vmul.f32 20.0, %v557_v42  ;;  %v518_v45 = vpop.f32.mrb[1].mxu0  ;;  %v559_v46 = vpop.f32.mrb[1].mxu1  ;;  %v604_v42 = vld [vmem:[#allocation4] sm:$0xff] }
 0x1ba   : > { %v565_v47 = vmul.f32 20.0, %v518_v45  ;;  %v567_v48 = vmul.f32 20.0, %v559_v46  ;;  %v520_v49 = vpop.f32.mrb[2].mxu0  ;;  %v561_v50 = vpop.f32.mrb[2].mxu1 }
 0x1bb   : > { %v521_v51 = vpop.f32.mrb[3].mxu0  ;;  %v562_v52 = vpop.f32.mrb[3].mxu1 }
 0x1bc   : > { %v569_v53 = vadd.f32 %v565_v47, %v564_v43  ;;  %v578_v54 = vmax.f32 %v564_v43, %v565_v47  ;;  %v579_v55 = vmax.f32 %v566_v44, %v567_v48 }
 0x1be   : > { %v580_v56 = vmax.f32 %v578_v54, %v579_v55  ;;  %v570_v57 = vadd.f32 %v569_v53, %v566_v44 }
 0x1c0   : > { %581 = vmax.xlane.f32.xlu0 %v580_v56  ;;  %v571_v58 = vadd.f32 %v570_v57, %v567_v48 }
 0x1c4   : > { %572 = vadd.xlane.f32.xlu0 %v571_v58 }
 0x24d   : > { %v582_v62 = vpop.xlane.xlu0 %581 }
 0x24e   : > { %v583_v63 = vmax.f32 %v577_v61, %v582_v62 }
 0x250   : > { %v584_v1 = vsub.f32 %v577_v61, %v583_v63  ;;  %646 = vst.msk [vmem:[#allocation3] sm:$0xff] %vm220_vm0, %v583_v63  ;;  %589 = vperm.xlu1 %927, %v583_v63  }
 0x251   : > { %v573_v2 = vpop.xlane.xlu0 %572 }
 0x252   : > { %v574_v4 = vadd.f32 %v573_v2, %v568_v0  ;;  %v585_v40 = vmul.f32 1.442695, %v584_v1 }
 0x254   : > { %576 = vst.msk [vmem:[#allocation6] sm:$0xff] %vm220_vm0, %v574_v4  ;;  %627 = vperm.xlu1 %927, %v625_v3  }
 0x257   : > { %v651_v52 = vld [vmem:[#allocation3] sm:$0xff] }
 0x25b   : > { %v657_v39 = vld [vmem:[#allocation6] sm:$0xff] }
 0x2cf   : > { %v590_v5 = vpop.permute.xlu1 %589 }
 0x2d0   : > { %v592_v7 = vsub.f32 %v564_v43, %v590_v5  ;;  %v593_v8 = vsub.f32 %v565_v47, %v590_v5  ;;  %v594_v9 = vsub.f32 %v566_v44, %v590_v5  ;;  %v595_v10 = vsub.f32 %v567_v48, %v590_v5  ;;  %v642_v43 = vld [vmem:[#allocation5] sm:$0xff] }
 0x2d2   : > { %v596_v11 = vmul.f32 1.442695, %v592_v7  ;;  %v598_v12 = vmul.f32 1.442695, %v593_v8  ;;  %v600_v13 = vmul.f32 1.442695, %v594_v9 }
 0x2d3   : > { %v602_v14 = vmul.f32 1.442695, %v595_v10  ;;  %v628_v21 = vpop.permute.xlu1 %627 }
 0x2d4   : > { %963 = vpow2.f32 %v596_v11  ;;  %vm629_vm1 = vcmp.eq.s32.totalorder %v621_v19, %v628_v21  ;;  %vm630_vm2 = vcmp.eq.s32.totalorder %v622_v20, %v628_v21  ;;  %vm631_vm3 = vcmp.eq.s32.totalorder %v623_v23, %v628_v21 }
 0x2d5   : > { %965 = vpow2.f32 %v598_v12  ;;  %vm632_vm4 = vcmp.eq.s32.totalorder %v624_v26, %v628_v21 }
 0x2d6   : > { %967 = vpow2.f32 %v600_v13 }
 0x2d7   : > { %969 = vpow2.f32 %v602_v14 }
 0x2d8   : > { %971 = vpow2.f32 %v585_v40 }
 0x2de   : > { %v964_v24 = vpop.eup %963 }
 0x2df   : > { %v966_v25 = vpop.eup %965  ;;  %v633_v27 = vsel %vm629_vm1, %v964_v24, 0.0 }
 0x2e0   : > { %v968_v28 = vpop.eup %967  ;;  %v606_v29 = vadd.f32 %v966_v25, %v964_v24  ;;  %v634_v30 = vsel %vm630_vm2, %v966_v25, 0.0 }
 0x2e1   : > { %v970_v31 = vpop.eup %969  ;;  %v637_v32 = vadd.f32 %v634_v30, %v633_v27  ;;  %v635_v34 = vsel %vm631_vm3, %v968_v28, 0.0 }
 0x2e2   : > { %v607_v33 = vadd.f32 %v968_v28, %v606_v29  ;;  %v636_v37 = vsel %vm632_vm4, %v970_v31, 0.0  ;;  %v972_v41 = vpop.eup %971 }
 0x2e3   : > { %v638_v35 = vadd.f32 %v637_v32, %v635_v34  ;;  %v605_v44 = vmul.f32 %v972_v41, %v604_v42  ;;  %v643_v46 = vmul.f32 %v972_v41, %v642_v43 }
 0x2e4   : > { %v608_v36 = vadd.f32 %v970_v31, %v607_v33 }
 0x2e5   : > { %v639_v38 = vadd.f32 %v638_v35, %v636_v37 }
 0x2e6   : > { %609 = vadd.xlane.f32.xlu0 %v608_v36 }
 0x2e7   : > { %640 = vadd.xlane.f32.xlu1 %v639_v38 }
 0x2fc   : > { %660 = vperm.xlu0 %928, %v657_v39  }
 0x373   : > { %v610_v45 = vpop.xlane.xlu0 %609 }
 0x374   : > { %v611_v47 = vadd.f32 %v610_v45, %v605_v44  ;;  %v641_v48 = vpop.xlane.xlu1 %640 }
 0x375   : > { %v644_v49 = vadd.f32 %v643_v46, %v641_v48 }
 0x376   : > { %612 = vst.msk [vmem:[#allocation4] sm:$0xff] %vm220_vm0, %v611_v47 }
 0x377   : > { %645 = vst.msk [vmem:[#allocation5] sm:$0xff] %vm220_vm0, %v644_v49 }
 0x37b   : > { %v661_v53 = vpop.permute.xlu0 %660 }
 0x37c   : > { %v663_v54 = vsel %vm656_vm5, %v661_v53, 0.0 }
 0x37d   : > { %v653_v50 = vld [vmem:[#allocation4] sm:$0xff] }
 0x37e   : > { %672 = vperm.xlu0 %928, %v653_v50   ;;  %v655_v51 = vld [vmem:[#allocation5] sm:$0xff] }
 0x37f   : > { %666 = vperm.xlu1 %927, %v655_v51  }
 0x383   : > { %678 = vperm.xlu1 %927, %v651_v52  }
 0x3fd   : > { %v673_v57 = vpop.permute.xlu0 %672 }
 0x3fe   : > { %v667_v55 = vpop.permute.xlu1 %666 }
 0x3ff   : > { %v669_v56 = vsel %vm654_vm6, %v667_v55, %v663_v54 }
 0x400   : > { %v675_v59 = vsel %vm652_vm7, %v673_v57, %v669_v56 }
 0x402   : > { %v679_v58 = vpop.permute.xlu1 %678 }
 0x403   : > { %v681_v60 = vsel %vm650_vm8, %v679_v58, %v675_v59 }
 0x404   : > { %682 = vst [vmem:[%s203_s28] sm:$0xff] %v681_v60 }
 0x405   : > { %1016 = shalt.err (!%p1013_p5)
}
 0x406   : > { %s1017_s11 = scalar_lea.hbm %s1303_s5, 128  ;;  %s1021_s24 = scalar_lea.hbm %s1355_s3, 256 }
 0x407   : > { %p1018_p4 = scmp.ne.s32.totalorder %s1303_s5, %s1017_s11  ;;  %p1022_p12 = scmp.lt.u32.totalorder %s1303_s5, %s1355_s3 }
 0x408   : > { %p1023_p1 = scmp.lt.u32.totalorder %s1021_s24, %s1017_s11  ;;  %p1025_p8 = scmp.lt.u32.totalorder %s1017_s11, %s1303_s5 }
 0x409   : > { %p1019_p7 = pnand %p1018_p4, %p1363_p9 }
 0x40a   : > { %p1024_p3 = por %p1023_p1, %p1022_p12 }
 0x40b   : > { %p1020_p10 = pneg %p1019_p7 }
 0x40c   : > { %p1026_p11 = por %p1025_p8, %p1024_p3 }
 0x40e   : > { %p1027_p0 = pnand %p1026_p11, %p1020_p10 }
 0x410   : > { %1030 = shalt.err (!%p1027_p0)
}
 0x411   : > { %862 = dma.vmem_to_hbm [thread:$0]  (%p1363_p9), %s1305_s29, 128, %s1303_s5, %s684_s15  }
 0x412 PF: > { %s709_s22 = sand.u32 1, %s1065_s12   ;;  %p1364_p6 = scmp.ne.s32.totalorder %s1360_s27, 0 }
 0x413   : > { %p1365_p13 = scmp.ge.s32.totalorder %s1085_s17, 2  ;;  %s710_s23 = scalar_lea.sflag [#allocation9], %s709_s22 }
 0x415   : > { %p869_p2 = pnand %p1365_p13, %p1364_p6 }
 0x417   : > { %1060 = dma.done.wait (!%p869_p2), %s710_s23, 128  }
 0x418   : > { %1062 = vsyncadd (!%p869_p2), %s710_s23, 4294967168  ;;  %s19_s17 = sadd.s32 1, %s1085_s17   ;;  %s1366_s12 = smov %s1069_s13 }
 0x419   : > { %p16_p5 = scmp.ge.s32.totalorder %s19_s17, 4   ;;  %s1367_s13 = smov %s1073_s14 }
 0x41a   : > { %s1368_s14 = smov %s1170_s26  ;;  %s1369_s15 = smov %s1081_s16 }
 0x41b   : > { %s1370_s16 = smov %s1372_s20  ;;  %18 = sbr.rel (!%p16_p5) target bundleno = 6 (0x6), region = 85 }
 0x422   :  { %715 = vsyncpa [#allocation8], 1 }
 0x423   :  { %717 = vsyncpa [#allocation8 + $0x1], 1 }
 0x424   :  { %718 = vsyncpa [#allocation9], 1 }
 0x425   :  { %720 = vsyncpa [#allocation9 + $0x1], 1 }

</bundles_post_ra>
